<compile_context>
chip_gen: v7x
topology: tpu7x:2x2x1
jax: 0.10.0
libtpu: 0.0.40
codegen_flags: <defaults>
</compile_context>

<pallas_src>
import functools
import math

import numpy as np
import jax
import jax.numpy as jnp
from jax import lax
from jax.experimental import pallas as pl
from jax.experimental.pallas import tpu as pltpu

NEG = -1e30  # additive mask value (exp underflows to exactly 0 in f32)


# ----------------------------------------------------------------------------
# Mask construction (faithful ports of init_biased_mask / enc_dec_mask)
# ----------------------------------------------------------------------------
def _get_slopes(n):
    def pow2(n):
        start = 2.0 ** (-(2.0 ** -(math.log2(n) - 3)))
        return [start * (start ** i) for i in range(n)]

    if math.log2(n).is_integer():
        return pow2(n)
    closest = 2 ** math.floor(math.log2(n))
    return pow2(closest) + _get_slopes(2 * closest)[0::2][: n - closest]


def init_biased_mask(n_head, max_seq_len, period):
    slopes = np.array(_get_slopes(n_head), dtype=np.float32)
    bias = np.arange(0, max_seq_len, period)[:, None].repeat(period, axis=1)
    bias = bias.reshape(-1) // period
    bias = -np.flip(bias)
    alibi = np.zeros((max_seq_len, max_seq_len), dtype=np.float32)
    for i in range(max_seq_len):
        alibi[i, : i + 1] = bias[-(i + 1):]
    alibi = slopes[:, None, None] * alibi[None]
    causal = np.triu(np.ones((max_seq_len, max_seq_len), dtype=np.float32)).T
    causal = np.where(causal == 1, 0.0, NEG).astype(np.float32)
    return (causal[None] + alibi).astype(np.float32)  # (n_head, S, S)


def enc_dec_mask_add(T, S):
    m = np.full((T, S), NEG, dtype=np.float32)
    np.fill_diagonal(m, 0.0)
    return m


# ----------------------------------------------------------------------------
# Generic row-tiled linear kernel
# ----------------------------------------------------------------------------
def _linear_kernel(x_ref, w_ref, b_ref, o_ref, *, relu):
    y = jnp.dot(x_ref[...], w_ref[...], preferred_element_type=jnp.float32) + b_ref[...]
    if relu:
        y = jnp.maximum(y, 0.0)
    o_ref[...] = y.astype(o_ref.dtype)


def pallas_linear(x, w, b, relu=False, tile_rows=256):
    """x: (N, in), w: (in, out), b: (1, out) -> (N, out), row-tiled."""
    n, k = x.shape
    m = w.shape[1]
    tm = min(tile_rows, n)
    return pl.pallas_call(
        functools.partial(_linear_kernel, relu=relu),
        out_shape=jax.ShapeDtypeStruct((n, m), jnp.float32),
        grid=(pl.cdiv(n, tm),),
        in_specs=[pl.BlockSpec((tm, k), lambda i: (i, 0)),
                  pl.BlockSpec((k, m), lambda i: (0, 0)),
                  pl.BlockSpec((1, m), lambda i: (0, 0))],
        out_specs=pl.BlockSpec((tm, m), lambda i: (i, 0)),
        compiler_params=pltpu.CompilerParams(dimension_semantics=("parallel",)),
    )(x, w, b)


# ----------------------------------------------------------------------------
# Fused front-end: frames -> [cont_feat | GRU input gate pre-activations]
#   cont = frames @ (fe_cont_w @ proj_w) + proj_b
#   emo  = relu(frames @ (fe_emo_w @ emo_map_w) + emo_map_b)
#   gi   = emo @ [wi_fwd | wi_bwd] + [bi_fwd | bi_bwd]      (hoisted GRU input proj)
#   out  = [cont (Dt) | gi (6H)]   -> lane-dense 128-wide output at default cfg
# ----------------------------------------------------------------------------
def _frontend_kernel(frames_ref, wc_ref, bc_ref, wi_ref, bi_ref, o_ref, *, dt):
    y = jnp.dot(frames_ref[...], wc_ref[...],
                preferred_element_type=jnp.float32) + bc_ref[...]
    cont = y[:, :dt]
    emo = jnp.maximum(y[:, dt:], 0.0)
    gates = jnp.dot(emo, wi_ref[...], preferred_element_type=jnp.float32) + bi_ref[...]
    o_ref[...] = jnp.concatenate([cont, gates], axis=-1).astype(o_ref.dtype)


def pallas_frontend(frames, w_cat, b_cat, wi_cat, bi_cat, dt, tile_rows=256):
    n, hop = frames.shape
    d2 = w_cat.shape[1]
    g = wi_cat.shape[1]
    out_w = dt + g
    tm = min(tile_rows, n)
    cost = pl.CostEstimate(
        flops=int(2 * n * (hop * d2 + dt * g)),
        transcendentals=0,
        bytes_accessed=int(4 * (n * hop + n * out_w + hop * d2 + dt * g)))
    return pl.pallas_call(
        functools.partial(_frontend_kernel, dt=dt),
        out_shape=jax.ShapeDtypeStruct((n, out_w), jnp.float32),
        grid=(pl.cdiv(n, tm),),
        in_specs=[pl.BlockSpec((tm, hop), lambda i: (i, 0)),
                  pl.BlockSpec((hop, d2), lambda i: (0, 0)),
                  pl.BlockSpec((1, d2), lambda i: (0, 0)),
                  pl.BlockSpec((dt, g), lambda i: (0, 0)),
                  pl.BlockSpec((1, g), lambda i: (0, 0))],
        out_specs=pl.BlockSpec((tm, out_w), lambda i: (i, 0)),
        compiler_params=pltpu.CompilerParams(dimension_semantics=("parallel",)),
        cost_estimate=cost,
    )(frames, w_cat, b_cat, wi_cat, bi_cat)


# ----------------------------------------------------------------------------
# Fused bidirectional GRU (input projection already hoisted into the front-end)
#   gi layout along the last axis: [fwd r,z,n (3H) | bwd r,z,n (3H)]
# ----------------------------------------------------------------------------
def _gru_bidir_kernel(gi_ref, whf_ref, whb_ref, bhf_ref, bhb_ref, of_ref, ob_ref):
    T, B, _ = gi_ref.shape
    H = whf_ref.shape[0]
    whf = whf_ref[...]
    whb = whb_ref[...]
    bhf = bhf_ref[...]
    bhb = bhb_ref[...]

    def gru_cell(gi, h, wh, bh):
        gh = jnp.dot(h, wh, preferred_element_type=jnp.float32) + bh
        r = jax.nn.sigmoid(gi[:, :H] + gh[:, :H])
        z = jax.nn.sigmoid(gi[:, H:2 * H] + gh[:, H:2 * H])
        n = jnp.tanh(gi[:, 2 * H:] + r * gh[:, 2 * H:])
        return (1.0 - z) * n + z * h

    def step(t, carry):
        hf, hb = carry
        tb = T - 1 - t
        gi_f = gi_ref[t][:, :3 * H]
        gi_b = gi_ref[tb][:, 3 * H:]
        hf_new = gru_cell(gi_f, hf, whf, bhf)
        hb_new = gru_cell(gi_b, hb, whb, bhb)
        of_ref[t] = hf_new
        ob_ref[tb] = hb_new
        return (hf_new, hb_new)

    lax.fori_loop(0, T, step,
                  (jnp.zeros((B, H), jnp.float32), jnp.zeros((B, H), jnp.float32)))


def pallas_gru_bidir(gi_tbc, gru_params):
    """gi_tbc: (T, B, 6H) precomputed gate pre-activations. Returns (B, T, 2H)."""
    T, B, _ = gi_tbc.shape
    H = gru_params["fwd"]["wh"].shape[0]
    of, ob = pl.pallas_call(
        _gru_bidir_kernel,
        out_shape=(jax.ShapeDtypeStruct((T, B, H), jnp.float32),
                   jax.ShapeDtypeStruct((T, B, H), jnp.float32)),
    )(gi_tbc, gru_params["fwd"]["wh"], gru_params["bwd"]["wh"],
      gru_params["fwd"]["bh"], gru_params["bwd"]["bh"])
    out = jnp.concatenate([of, ob], axis=-1)  # (T, B, 2H)
    return jnp.transpose(out, (1, 0, 2))      # (B, T, 2H)


# ----------------------------------------------------------------------------
# Fused FiLM + [level|person] concat + memory projection
#   fused  = [ (emo@Wg+bg) * cont + (emo@Wb+bb)  |  level_emb | person_emb ]
#   memory = emo @ W_mem + b_mem
# ----------------------------------------------------------------------------
def _prepare_kernel(emo_ref, cont_ref, lp_ref, wg_ref, bg_ref, wb_ref, bb_ref,
                    wm_ref, bm_ref, fused_ref, mem_ref):
    emo = emo_ref[...]
    gamma = jnp.dot(emo, wg_ref[...], preferred_element_type=jnp.float32) + bg_ref[...]
    beta = jnp.dot(emo, wb_ref[...], preferred_element_type=jnp.float32) + bb_ref[...]
    mod = gamma * cont_ref[...] + beta
    fused_ref[...] = jnp.concatenate([mod, lp_ref[...]], axis=-1).astype(fused_ref.dtype)
    mem_ref[...] = (jnp.dot(emo, wm_ref[...], preferred_element_type=jnp.float32)
                    + bm_ref[...]).astype(mem_ref.dtype)


def pallas_prepare(emo_bi, cont, lp, p, tile_rows=256):
    n, two_h = emo_bi.shape
    dt = cont.shape[1]
    dlp = lp.shape[1]
    dm = p["mem_proj_w"].shape[1]
    tm = min(tile_rows, n)

    def const_spec(arr):
        nd = arr.ndim
        return pl.BlockSpec(arr.shape, lambda i, _nd=nd: (0,) * _nd)

    return pl.pallas_call(
        _prepare_kernel,
        out_shape=(jax.ShapeDtypeStruct((n, dt + dlp), jnp.float32),
                   jax.ShapeDtypeStruct((n, dm), jnp.float32)),
        grid=(pl.cdiv(n, tm),),
        in_specs=[pl.BlockSpec((tm, two_h), lambda i: (i, 0)),
                  pl.BlockSpec((tm, dt), lambda i: (i, 0)),
                  pl.BlockSpec((tm, dlp), lambda i: (i, 0)),
                  const_spec(p["film_g_w"]), const_spec(p["film_g_b"]),
                  const_spec(p["film_b_w"]), const_spec(p["film_b_b"]),
                  const_spec(p["mem_proj_w"]), const_spec(p["mem_proj_b"])],
        out_specs=(pl.BlockSpec((tm, dt + dlp), lambda i: (i, 0)),
                   pl.BlockSpec((tm, dm), lambda i: (i, 0))),
        compiler_params=pltpu.CompilerParams(dimension_semantics=("parallel",)),
    )(emo_bi, cont, lp, p["film_g_w"], p["film_g_b"], p["film_b_w"], p["film_b_b"],
      p["mem_proj_w"], p["mem_proj_b"])


# ----------------------------------------------------------------------------
# Fused TransformerDecoder stack (post-norm layers, relu FF, no dropout)
# + final bs linear.  Grid = (batch[parallel], layer[arbitrary]); the activation
# stays in a VMEM scratch across layers; attention heads are batched einsums.
# ----------------------------------------------------------------------------
def _decoder_stack_kernel(fused_ref, mem_ref, tmask_ref, mmask_ref,
                          sa_w_ref, sa_b_ref, sa_wo_ref, sa_bo_ref,
                          ca_w_ref, ca_b_ref, ca_wo_ref, ca_bo_ref,
                          ff_w1_ref, ff_b1_ref, ff_w2_ref, ff_b2_ref,
                          ln_g_ref, ln_b_ref, bs_w_ref, bs_b_ref,
                          o_ref, x_scr, *, nhead):
    layer = pl.program_id(1)

    @pl.when(layer == 0)
    def _():
        x_scr[...] = fused_ref[...]

    x = x_scr[...]        # (T, D)
    mem = mem_ref[...]    # (S, D)
    d = x.shape[1]
    hd = d // nhead
    scale = 1.0 / math.sqrt(hd)

    ln_g = ln_g_ref[...]  # (3, 1, D)
    ln_b = ln_b_ref[...]

    def layer_norm(v, i):
        mu = jnp.mean(v, axis=-1, keepdims=True)
        var = jnp.mean(jnp.square(v - mu), axis=-1, keepdims=True)
        return (v - mu) * lax.rsqrt(var + 1e-5) * ln_g[i] + ln_b[i]

    def mha(q_in, kv_in, w_ref, b_ref, wo_ref, bo_ref, mask):
        w = w_ref[...]    # (3, nhead, D, hd)
        b = b_ref[...]    # (3, nhead, 1, hd)
        qb = jnp.broadcast_to(q_in[None], (nhead,) + q_in.shape)
        kb = jnp.broadcast_to(kv_in[None], (nhead,) + kv_in.shape)
        q = jnp.einsum('htd,hdk->htk', qb, w[0], preferred_element_type=jnp.float32) + b[0]
        k = jnp.einsum('hsd,hdk->hsk', kb, w[1], preferred_element_type=jnp.float32) + b[1]
        v = jnp.einsum('hsd,hdk->hsk', kb, w[2], preferred_element_type=jnp.float32) + b[2]
        s = jnp.einsum('htk,hsk->hts', q, k, preferred_element_type=jnp.float32) * scale
        s = s + mask
        s = s - jnp.max(s, axis=-1, keepdims=True)
        p = jnp.exp(s)
        p = p * pl.reciprocal(jnp.sum(p, axis=-1, keepdims=True), approx=True)
        ctx = jnp.einsum('hts,hsk->htk', p, v, preferred_element_type=jnp.float32)
        out = jnp.einsum('htk,hkm->htm', ctx, wo_ref[...],
                         preferred_element_type=jnp.float32)
        return jnp.sum(out, axis=0) + bo_ref[...]

    # self-attention with per-head ALiBi + causal additive mask
    sa = mha(x, x, sa_w_ref, sa_b_ref, sa_wo_ref, sa_bo_ref, tmask_ref[...])
    x = layer_norm(x + sa, 0)
    # cross-attention with diagonal-only enc-dec mask (shared across heads)
    ca = mha(x, mem, ca_w_ref, ca_b_ref, ca_wo_ref, ca_bo_ref, mmask_ref[...][None])
    x = layer_norm(x + ca, 1)
    # feed-forward
    ff = jnp.maximum(jnp.dot(x, ff_w1_ref[...], preferred_element_type=jnp.float32)
                     + ff_b1_ref[...], 0.0)
    ff = jnp.dot(ff, ff_w2_ref[...], preferred_element_type=jnp.float32) + ff_b2_ref[...]
    x = layer_norm(x + ff, 2)
    x_scr[...] = x

    # TransformerDecoder(norm=None) -> no final norm; fold the bs linear here.
    @pl.when(layer == pl.num_programs(1) - 1)
    def _():
        o_ref[...] = (jnp.dot(x, bs_w_ref[...], preferred_element_type=jnp.float32)
                      + bs_b_ref[...]).astype(o_ref.dtype)


def pack_decoder_weights(layers, nhead):
    """Stack per-layer weights into per-head layouts indexed by a layer grid axis."""
    Dm = layers[0]["sa_wo"].shape[0]
    hd = Dm // nhead

    def split_qkv(wqkv, bqkv):
        w = wqkv.reshape(Dm, 3, nhead, hd).transpose(1, 2, 0, 3)  # (3, nhead, Dm, hd)
        b = bqkv.reshape(1, 3, nhead, hd).transpose(1, 2, 0, 3)   # (3, nhead, 1, hd)
        return w, b

    keys = ["sa_w", "sa_b", "sa_wo", "sa_bo", "ca_w", "ca_b", "ca_wo", "ca_bo",
            "ff_w1", "ff_b1", "ff_w2", "ff_b2", "ln_g", "ln_b"]
    acc = {k: [] for k in keys}
    for lw in layers:
        sw, sb = split_qkv(lw["sa_wqkv"], lw["sa_bqkv"])
        cw, cb = split_qkv(lw["ca_wqkv"], lw["ca_bqkv"])
        acc["sa_w"].append(sw)
        acc["sa_b"].append(sb)
        acc["sa_wo"].append(lw["sa_wo"].reshape(nhead, hd, Dm))
        acc["sa_bo"].append(lw["sa_bo"])
        acc["ca_w"].append(cw)
        acc["ca_b"].append(cb)
        acc["ca_wo"].append(lw["ca_wo"].reshape(nhead, hd, Dm))
        acc["ca_bo"].append(lw["ca_bo"])
        acc["ff_w1"].append(lw["ff_w1"])
        acc["ff_b1"].append(lw["ff_b1"])
        acc["ff_w2"].append(lw["ff_w2"])
        acc["ff_b2"].append(lw["ff_b2"])
        acc["ln_g"].append(jnp.stack([lw["ln1_g"], lw["ln2_g"], lw["ln3_g"]]))
        acc["ln_b"].append(jnp.stack([lw["ln1_b"], lw["ln2_b"], lw["ln3_b"]]))
    return {k: jnp.stack(v) for k, v in acc.items()}, keys


def pallas_decoder_stack(fused, memory, tgt_mask, mem_mask, packed, order,
                         bs_w, bs_b, nhead):
    B, T, Dm = fused.shape
    S = memory.shape[1]
    L = packed["sa_w"].shape[0]
    bs_dim = bs_w.shape[1]

    def layer_spec(arr):
        nd = arr.ndim
        return pl.BlockSpec((None,) + arr.shape[1:],
                            lambda b, l, _nd=nd: (l,) + (0,) * (_nd - 1))

    def const_spec(arr):
        nd = arr.ndim
        return pl.BlockSpec(arr.shape, lambda b, l, _nd=nd: (0,) * _nd)

    in_specs = [pl.BlockSpec((None, T, Dm), lambda b, l: (b, 0, 0)),
                pl.BlockSpec((None, S, Dm), lambda b, l: (b, 0, 0)),
                const_spec(tgt_mask),
                const_spec(mem_mask)]
    args = [fused, memory, tgt_mask, mem_mask]
    for name in order:
        arr = packed[name]
        in_specs.append(layer_spec(arr))
        args.append(arr)
    in_specs += [const_spec(bs_w), const_spec(bs_b)]
    args += [bs_w, bs_b]

    flops = int(B * L * (32 * T * Dm * Dm + 8 * T * S * Dm) + 2 * B * T * Dm * bs_dim)
    transc = int(B * L * nhead * T * (T + S))
    bytes_acc = int(4 * (sum(int(np.prod(a.shape)) for a in args) + B * T * bs_dim))

    # TODO(synk): for very large T on v7x, generate the ALiBi+causal mask in-kernel
    # from the per-head slopes instead of DMAing an (nhead, T, T) table.
    return pl.pallas_call(
        functools.partial(_decoder_stack_kernel, nhead=nhead),
        out_shape=jax.ShapeDtypeStruct((B, T, bs_dim), jnp.float32),
        grid=(B, L),
        in_specs=in_specs,
        out_specs=pl.BlockSpec((None, T, bs_dim), lambda b, l: (b, 0, 0)),
        scratch_shapes=[pltpu.VMEM((T, Dm), jnp.float32)],
        compiler_params=pltpu.CompilerParams(
            dimension_semantics=("parallel", "arbitrary")),
        cost_estimate=pl.CostEstimate(flops=flops, transcendentals=transc,
                                      bytes_accessed=bytes_acc),
    )(*args)


# ----------------------------------------------------------------------------
# Deterministic parameter init (shapes from the module's __init__)
# ----------------------------------------------------------------------------
def init_params(key, cfg):
    keys = iter(jax.random.split(key, 64))

    def nrm(shape, scale=0.05):
        return (scale * jax.random.normal(next(keys), shape)).astype(jnp.float32)

    Dt = cfg["transformer_dim"]
    H = cfg["emo_gru_hidden"]
    Dm = Dt + 64
    F = cfg["feat_dim"]
    hop = cfg["hop"]

    p = {}
    # TODO(synk): stand-in for the pretrained Wav2Vec2 encoders (frame + project).
    p["fe_cont_w"] = nrm((hop, F))
    p["fe_emo_w"] = nrm((hop, F))
    p["proj_w"] = nrm((F, Dt)); p["proj_b"] = nrm((1, Dt))          # extractor_proj
    p["emo_map_w"] = nrm((F, Dt)); p["emo_map_b"] = nrm((1, Dt))    # audio_feature_map_emo
    p["gru"] = {d: {"wi": nrm((Dt, 3 * H)), "wh": nrm((H, 3 * H)),
                    "bi": nrm((1, 3 * H)), "bh": nrm((1, 3 * H))}
                for d in ("fwd", "bwd")}
    p["film_g_w"] = nrm((2 * H, Dt)); p["film_g_b"] = nrm((1, Dt))
    p["film_b_w"] = nrm((2 * H, Dt)); p["film_b_b"] = nrm((1, Dt))
    p["level_w"] = nrm((cfg["num_emotions"], 32)); p["level_b"] = nrm((1, 32))
    p["person_emb"] = nrm((cfg["num_person"], 32))
    p["mem_proj_w"] = nrm((2 * H, Dm)); p["mem_proj_b"] = nrm((1, Dm))
    layers = []
    for _ in range(cfg["transformer_layers"]):
        layers.append({
            "sa_wqkv": nrm((Dm, 3 * Dm)), "sa_bqkv": nrm((1, 3 * Dm)),
            "sa_wo": nrm((Dm, Dm)), "sa_bo": nrm((1, Dm)),
            "ca_wqkv": nrm((Dm, 3 * Dm)), "ca_bqkv": nrm((1, 3 * Dm)),
            "ca_wo": nrm((Dm, Dm)), "ca_bo": nrm((1, Dm)),
            "ff_w1": nrm((Dm, 4 * Dm)), "ff_b1": nrm((1, 4 * Dm)),
            "ff_w2": nrm((4 * Dm, Dm)), "ff_b2": nrm((1, Dm)),
            "ln1_g": jnp.ones((1, Dm), jnp.float32), "ln1_b": jnp.zeros((1, Dm), jnp.float32),
            "ln2_g": jnp.ones((1, Dm), jnp.float32), "ln2_b": jnp.zeros((1, Dm), jnp.float32),
            "ln3_g": jnp.ones((1, Dm), jnp.float32), "ln3_b": jnp.zeros((1, Dm), jnp.float32),
        })
    p["layers"] = layers
    p["bs_w"] = nrm((Dm, cfg["bs_dim"])); p["bs_b"] = nrm((1, cfg["bs_dim"]))
    return p


# ----------------------------------------------------------------------------
# Forward pass (mirrors EmoTalk.forward, eval semantics)
# ----------------------------------------------------------------------------
def emotalk_forward(params, cfg, audio, level, person):
    # Host-side label validation (must stay OUTSIDE jax.jit — it reads values).
    level_np = np.asarray(level)
    person_np = np.asarray(person)
    if not (level_np.min() >= 1 and level_np.max() <= cfg["num_emotions"]):
        raise ValueError(f"Level labels must be in [1, {cfg['num_emotions']}], got {level_np}")
    if not (person_np.min() >= 1 and person_np.max() <= cfg["num_person"]):
        raise ValueError(f"Person labels must be in [1, {cfg['num_person']}], got {person_np}")
    level = jnp.asarray(level_np - 1, jnp.int32)
    person = jnp.asarray(person_np - 1, jnp.int32)

    if audio.ndim == 4:
        audio = audio[:, 0, 0, :]
    elif audio.ndim == 3:
        audio = audio[:, 0, :]
    elif audio.ndim != 2:
        raise ValueError(f"Unsupported audio shape: {audio.shape}")

    B, L_audio = audio.shape
    hop = cfg["hop"]
    T = L_audio // hop
    Dt = cfg["transformer_dim"]
    H = cfg["emo_gru_hidden"]
    nhead = cfg["transformer_heads"]

    if T > cfg["max_seq_len"]:
        raise ValueError(f"Frame count {T} exceeds max_seq_len {cfg['max_seq_len']}")
    if B != 1:
        # The reference model's per-head tgt_mask only type-checks for batch size 1.
        raise ValueError("EmoTalk's biased per-head tgt_mask requires batch size 1")

    # Wav2Vec2FeatureExtractor-style per-utterance normalization.
    mean = jnp.mean(audio, axis=-1, keepdims=True)
    std = jnp.std(audio, axis=-1, keepdims=True)
    input_values = (audio - mean) / (std + 1e-7)

    # TODO(synk): pretrained Wav2Vec2 encoders replaced by deterministic frame+project stand-in.
    frames = input_values[:, : T * hop].reshape(B * T, hop)

    # Trace-time weight folding (extractor -> projection, no nonlinearity between)
    # plus concatenation of both branches and of the hoisted GRU input projection.
    w_cont = jnp.dot(params["fe_cont_w"], params["proj_w"])
    w_emo = jnp.dot(params["fe_emo_w"], params["emo_map_w"])
    w_cat = jnp.concatenate([w_cont, w_emo], axis=1)                       # (hop, 2Dt)
    b_cat = jnp.concatenate([params["proj_b"], params["emo_map_b"]], axis=1)
    wi_cat = jnp.concatenate([params["gru"]["fwd"]["wi"],
                              params["gru"]["bwd"]["wi"]], axis=1)         # (Dt, 6H)
    bi_cat = jnp.concatenate([params["gru"]["fwd"]["bi"],
                              params["gru"]["bwd"]["bi"]], axis=1)

    front = pallas_frontend(frames, w_cat, b_cat, wi_cat, bi_cat, Dt)      # (B*T, Dt+6H)
    cont_feat = front[:, :Dt]                                              # (B*T, Dt)
    gi_all = front[:, Dt:]                                                 # (B*T, 6H)

    gi_tbc = jnp.transpose(gi_all.reshape(B, T, 6 * H), (1, 0, 2))         # (T, B, 6H)
    emo_feat_bi = pallas_gru_bidir(gi_tbc, params["gru"])                  # (B, T, 2H)
    emo_bi_flat = emo_feat_bi.reshape(B * T, 2 * H)

    onehot = jax.nn.one_hot(level, cfg["num_emotions"], dtype=jnp.float32)  # (B, E)
    level_emb = pallas_linear(onehot, params["level_w"], params["level_b"])  # (B, 32)
    person_emb = params["person_emb"][person]                                # (B, 32)
    lp = jnp.concatenate([level_emb, person_emb], axis=-1)                   # (B, 64)
    lp = jnp.broadcast_to(lp[:, None, :], (B, T, 64)).reshape(B * T, 64)

    fused_flat, memory_flat = pallas_prepare(emo_bi_flat, cont_feat, lp, params)
    Dm = fused_flat.shape[-1]
    fused = fused_flat.reshape(B, T, Dm)
    memory = memory_flat.reshape(B, T, Dm)

    tgt_mask = jnp.asarray(cfg["biased_mask"][:, :T, :T])
    mem_mask = jnp.asarray(enc_dec_mask_add(T, T))

    packed, order = pack_decoder_weights(params["layers"], nhead)
    bs = pallas_decoder_stack(fused, memory, tgt_mask, mem_mask, packed, order,
                              params["bs_w"], params["bs_b"], nhead)
    # TODO(synk): training-only F.interpolate to args.target_len skipped (eval semantics).
    return bs  # (B, T, bs_dim)


# ----------------------------------------------------------------------------
if __name__ == "__main__":
    cfg = dict(transformer_dim=32, emo_gru_hidden=16, emo_gru_layers=1,
               num_emotions=8, num_person=6, transformer_heads=4,
               transformer_layers=2, bs_dim=52, max_seq_len=32, period=4,
               feat_dim=64, hop=320)
    cfg["biased_mask"] = init_biased_mask(cfg["transformer_heads"],
                                          cfg["max_seq_len"], cfg["period"])

    key = jax.random.PRNGKey(0)
    k_params, k_audio = jax.random.split(key)
    params = init_params(k_params, cfg)

    B, T = 1, 8  # original model's per-head tgt_mask implies batch size 1
    audio = jax.random.normal(k_audio, (B, 1, T * cfg["hop"]), dtype=jnp.float32)
    level = jnp.array([3], dtype=jnp.int32)    # in [1, num_emotions]
    person = jnp.array([2], dtype=jnp.int32)   # in [1, num_person]

    out = emotalk_forward(params, cfg, audio, level, person)
    out = jax.block_until_ready(out)
    assert out.shape == (B, T, cfg["bs_dim"]) and out.dtype == jnp.float32
    assert bool(jnp.all(jnp.isfinite(out)))
    print("KERNEL_OK")
</pallas_src>

<mosaic_0001>
module attributes {stable_mosaic.version = 11 : i64} {
  func.func @_frontend_kernel(%arg0: i32, %arg1: memref<8x320xf32, #tpu.memory_space<vmem>>, %arg2: memref<320x64xf32, #tpu.memory_space<vmem>>, %arg3: memref<1x64xf32, #tpu.memory_space<vmem>>, %arg4: memref<32x96xf32, #tpu.memory_space<vmem>>, %arg5: memref<1x96xf32, #tpu.memory_space<vmem>>, %arg6: memref<8x128xf32, #tpu.memory_space<vmem>>) attributes {dimension_semantics = [#tpu.dimension_semantics<parallel>], iteration_bounds = array<i64: 1>, scalar_prefetch = 0 : i64, scratch_operands = 0 : i64, tpu.core_type = #tpu.core_type<tc>, window_params = [{transform_indices = @transform_0, window_bounds = array<i64: 8, 320>}, {pipeline_mode = #tpu.pipeline_mode<synchronous>, transform_indices = @transform_1, window_bounds = array<i64: 320, 64>}, {pipeline_mode = #tpu.pipeline_mode<synchronous>, transform_indices = @transform_2, window_bounds = array<i64: 1, 64>}, {pipeline_mode = #tpu.pipeline_mode<synchronous>, transform_indices = @transform_3, window_bounds = array<i64: 32, 96>}, {pipeline_mode = #tpu.pipeline_mode<synchronous>, transform_indices = @transform_4, window_bounds = array<i64: 1, 96>}, {transform_indices = @transform_5, window_bounds = array<i64: 8, 128>}]} {
    %c0 = arith.constant 0 : index
    %c0_0 = arith.constant 0 : index
    %0 = vector.load %arg1[%c0, %c0_0] : memref<8x320xf32, #tpu.memory_space<vmem>>, vector<8x320xf32>
    %c0_1 = arith.constant 0 : index
    %c0_2 = arith.constant 0 : index
    %1 = vector.load %arg2[%c0_1, %c0_2] : memref<320x64xf32, #tpu.memory_space<vmem>>, vector<320x64xf32>
    %cst = arith.constant dense<0.000000e+00> : vector<8x64xf32>
    %2 = tpu.matmul %0, %1, %cst {dimension_numbers = #tpu.dot_dimension_numbers<[1], [0], [0], [1], [0, 0, 1, 1], [], []>} : vector<8x320xf32>, vector<320x64xf32>, vector<8x64xf32> -> vector<8x64xf32>
    %c0_3 = arith.constant 0 : index
    %c0_4 = arith.constant 0 : index
    %3 = vector.load %arg3[%c0_3, %c0_4] : memref<1x64xf32, #tpu.memory_space<vmem>>, vector<1x64xf32>
    %4 = vector.broadcast %3 : vector<1x64xf32> to vector<8x64xf32>
    %5 = arith.addf %2, %4 : vector<8x64xf32>
    %6 = vector.extract_strided_slice %5 {offsets = [0, 0], sizes = [8, 32], strides = [1, 1]} : vector<8x64xf32> to vector<8x32xf32>
    %7 = vector.extract_strided_slice %5 {offsets = [0, 32], sizes = [8, 32], strides = [1, 1]} : vector<8x64xf32> to vector<8x32xf32>
    %cst_5 = arith.constant 0.000000e+00 : f32
    %8 = vector.broadcast %cst_5 : f32 to vector<8x32xf32>
    %9 = arith.maximumf %7, %8 : vector<8x32xf32>
    %c0_6 = arith.constant 0 : index
    %c0_7 = arith.constant 0 : index
    %10 = vector.load %arg4[%c0_6, %c0_7] : memref<32x96xf32, #tpu.memory_space<vmem>>, vector<32x96xf32>
    %cst_8 = arith.constant dense<0.000000e+00> : vector<8x96xf32>
    %11 = tpu.matmul %9, %10, %cst_8 {dimension_numbers = #tpu.dot_dimension_numbers<[1], [0], [0], [1], [0, 0, 1, 1], [], []>} : vector<8x32xf32>, vector<32x96xf32>, vector<8x96xf32> -> vector<8x96xf32>
    %c0_9 = arith.constant 0 : index
    %c0_10 = arith.constant 0 : index
    %12 = vector.load %arg5[%c0_9, %c0_10] : memref<1x96xf32, #tpu.memory_space<vmem>>, vector<1x96xf32>
    %13 = vector.broadcast %12 : vector<1x96xf32> to vector<8x96xf32>
    %14 = arith.addf %11, %13 : vector<8x96xf32>
    %15 = tpu.concatenate %6, %14 in 1 : vector<8x32xf32>, vector<8x96xf32> -> vector<8x128xf32>
    %c0_11 = arith.constant 0 : index
    %c0_12 = arith.constant 0 : index
    %16 = vector.load %arg6[%c0_11, %c0_12] : memref<8x128xf32, #tpu.memory_space<vmem>>, vector<8x128xf32>
    tpu.vector_store %arg6[%c0_11, %c0_12], %15 {strides = array<i32>} : memref<8x128xf32, #tpu.memory_space<vmem>>, vector<8x128xf32>,
    return
  }
  func.func @transform_0(%arg0: i32) -> (i32, i32) {
    %c0_i32 = arith.constant 0 : i32
    %c0_i32_0 = arith.constant 0 : i32
    return %arg0, %c0_i32 : i32, i32
  }
  func.func @transform_1(%arg0: i32) -> (i32, i32) {
    %c0_i32 = arith.constant 0 : i32
    %c0_i32_0 = arith.constant 0 : i32
    %c0_i32_1 = arith.constant 0 : i32
    return %c0_i32, %c0_i32_0 : i32, i32
  }
  func.func @transform_2(%arg0: i32) -> (i32, i32) {
    %c0_i32 = arith.constant 0 : i32
    %c0_i32_0 = arith.constant 0 : i32
    %c0_i32_1 = arith.constant 0 : i32
    return %c0_i32, %c0_i32_0 : i32, i32
  }
  func.func @transform_3(%arg0: i32) -> (i32, i32) {
    %c0_i32 = arith.constant 0 : i32
    %c0_i32_0 = arith.constant 0 : i32
    %c0_i32_1 = arith.constant 0 : i32
    return %c0_i32, %c0_i32_0 : i32, i32
  }
  func.func @transform_4(%arg0: i32) -> (i32, i32) {
    %c0_i32 = arith.constant 0 : i32
    %c0_i32_0 = arith.constant 0 : i32
    %c0_i32_1 = arith.constant 0 : i32
    return %c0_i32, %c0_i32_0 : i32, i32
  }
  func.func @transform_5(%arg0: i32) -> (i32, i32) {
    %c0_i32 = arith.constant 0 : i32
    %c0_i32_0 = arith.constant 0 : i32
    return %arg0, %c0_i32 : i32, i32
  }
}

</mosaic_0001>

<bundles_post_ra>
// kernel: tpu_custom_call.1
= control target key start
LH: loop header
LB: loop body
LE: loop exit
PB: predicated region body
PF: predicated region fallthrough
CT: control target
= control target key end

     0   :  { %v486_v7 = vmov 0.0|0.0   ;;  %vm487_vm0 = vmmov 0   ;;  %v488_v8 = vmov 0.0   ;;  %s691_s0 = inlined_call_operand.vmem [shape: f32[8,320], index: 0, kind: input, shape index: {}]   ;;  %s692_s1 = inlined_call_operand.vmem [shape: f32[320,64], index: 1, kind: input, shape index: {}]   ;;  %s693_s2 = inlined_call_operand.vmem [shape: f32[1,64], index: 2, kind: input, shape index: {}]   ;;  %s694_s3 = inlined_call_operand.vmem [shape: f32[32,96], index: 3, kind: input, shape index: {}]   ;;  %s695_s4 = inlined_call_operand.vmem [shape: f32[1,96], index: 4, kind: input, shape index: {}]   ;;  %s696_s5 = inlined_call_operand.hbm [shape: f32[8,128], index: 5, kind: output, shape index: {}]  }
   0x1   :  { %v40_v0 = vld [vmem:[%s692_s1 + $0x80] sm:$0xff]  ;;  %v41_v1 = vld [vmem:[%s692_s1 + $0x88] sm:$0xff]  ;;  %v42_v5 = vld [vmem:[%s692_s1 + $0x90] sm:$0xff]  ;;  %438 = vmatprep.subr.bf16.mxu1 %v486_v7  ;;  %392 = vmatprep.mubr.msk.f32.mxu1 %vm487_vm0, %v488_v8 }
   0x2   :  { %v24_v2 = vld [vmem:[%s692_s1] sm:$0xff]  ;;  %v406_v3 = vpack.c.bf16 %v41_v1, %v40_v0  ;;  %v25_v4 = vld [vmem:[%s692_s1 + $0x8] sm:$0xff]  ;;  %v43_v6 = vld [vmem:[%s692_s1 + $0x98] sm:$0xff] }
   0x3   :  { %v408_v9 = vpack.c.bf16 %v25_v4, %v24_v2  ;;  %v410_v10 = vpack.c.bf16 %v43_v6, %v42_v5  ;;  %v26_v11 = vld [vmem:[%s692_s1 + $0x10] sm:$0xff]  ;;  %v27_v12 = vld [vmem:[%s692_s1 + $0x18] sm:$0xff]  ;;  %v44_v13 = vld [vmem:[%s692_s1 + $0xa0] sm:$0xff] }
   0x4   :  { %407 = vmatprep.subr.bf16.mxu0 %v406_v3  ;;  %v45_v14 = vld [vmem:[%s692_s1 + $0xa8] sm:$0xff]  ;;  %v412_v15 = vpack.c.bf16 %v27_v12, %v26_v11  ;;  %v28_v17 = vld [vmem:[%s692_s1 + $0x20] sm:$0xff]  ;;  %v46_v19 = vld [vmem:[%s692_s1 + $0xb0] sm:$0xff] }
   0x5   :  { %409 = vmatpush3.bf16.msra.mxu0 %v408_v9  ;;  %v414_v16 = vpack.c.bf16 %v45_v14, %v44_v13  ;;  %v29_v18 = vld [vmem:[%s692_s1 + $0x28] sm:$0xff]  ;;  %v47_v20 = vld [vmem:[%s692_s1 + $0xb8] sm:$0xff]  ;;  %v56_v22 = vld [vmem:[%s692_s1 + $0x100] sm:$0xff] }
   0x6   :  { %411 = vmatprep.subr.bf16.mxu0 %v410_v10  ;;  %v416_v21 = vpack.c.bf16 %v29_v18, %v28_v17  ;;  %v57_v23 = vld [vmem:[%s692_s1 + $0x108] sm:$0xff]  ;;  %v418_v24 = vpack.c.bf16 %v47_v20, %v46_v19  ;;  %v30_v25 = vld [vmem:[%s692_s1 + $0x30] sm:$0xff]  ;;  %v31_v26 = vld [vmem:[%s692_s1 + $0x38] sm:$0xff] }
   0x7   :  { %v48_v27 = vld [vmem:[%s692_s1 + $0xc0] sm:$0xff]  ;;  %v439_v28 = vpack.c.bf16 %v57_v23, %v56_v22  ;;  %v49_v29 = vld [vmem:[%s692_s1 + $0xc8] sm:$0xff]  ;;  %v58_v30 = vld [vmem:[%s692_s1 + $0x110] sm:$0xff]  ;;  %v420_v33 = vpack.c.bf16 %v31_v26, %v30_v25 }
   0x8   :  { %v59_v31 = vld [vmem:[%s692_s1 + $0x118] sm:$0xff]  ;;  %v60_v34 = vld [vmem:[%s692_s1 + $0x120] sm:$0xff]  ;;  %v61_v35 = vld [vmem:[%s692_s1 + $0x128] sm:$0xff]  ;;  %v422_v37 = vpack.c.bf16 %v49_v29, %v48_v27 }
   0x9   :  { %413 = vmatpush3.bf16.msra.mxu0 %v412_v15  ;;  %440 = vmatpush3.bf16.msra.mxu1 %v439_v28  ;;  %v442_v32 = vpack.c.bf16 %v59_v31, %v58_v30  ;;  %v22_v36 = vld [vmem:[%s691_s0 + $0x8] sm:$0xff]  ;;  %v32_v38 = vld [vmem:[%s692_s1 + $0x40] sm:$0xff]  ;;  %v50_v40 = vld [vmem:[%s692_s1 + $0xd0] sm:$0xff] }
   0xa   :  { %415 = vmatprep.subr.bf16.mxu0 %v414_v16  ;;  %441 = vmatprep.subr.bf16.mxu1 %v486_v7  ;;  %v33_v39 = vld [vmem:[%s692_s1 + $0x48] sm:$0xff]  ;;  %v51_v41 = vld [vmem:[%s692_s1 + $0xd8] sm:$0xff] }
   0xb   :  { %139 = vmatprep.mubr.f32.mxu0 %v22_v36 }
   0xd   :  { %417 = vmatpush3.bf16.msra.mxu0 %v416_v21 }
   0xe   :  { %419 = vmatprep.subr.bf16.mxu0 %v418_v24 }
   0xf   :  { %10 = vsyncpa [#allocation3], 0  ;;  %443 = vmatpush3.bf16.msra.mxu1 %v442_v32  ;;  %v445_v42 = vpack.c.bf16 %v61_v35, %v60_v34  ;;  %v424_v43 = vpack.c.bf16 %v33_v39, %v32_v38  ;;  %v62_v44 = vld [vmem:[%s692_s1 + $0x130] sm:$0xff]  ;;  %v63_v45 = vld [vmem:[%s692_s1 + $0x138] sm:$0xff]  ;;  %v426_v46 = vpack.c.bf16 %v51_v41, %v50_v40  ;;  %vm71_vm1 = vcmask 523264   ;;  %s489_s12 = smov 96  }
  0x10   :  { %444 = vmatprep.subr.bf16.mxu1 %v486_v7  ;;  %v34_v47 = vld [vmem:[%s692_s1 + $0x50] sm:$0xff]  ;;  %v35_v48 = vld [vmem:[%s692_s1 + $0x58] sm:$0xff]  ;;  %v52_v49 = vld [vmem:[%s692_s1 + $0xe0] sm:$0xff]  ;;  %v448_v51 = vpack.c.bf16 %v63_v45, %v62_v44  ;;  %vm230_vm2 = vcmask 261120   ;;  %s490_s14 = smov 32   ;;  %s491_s15 = smov [#allocation2]  }
  0x11   :  { %421 = vmatpush3.bf16.msra.mxu0 %v420_v33  ;;  %v53_v50 = vld [vmem:[%s692_s1 + $0xe8] sm:$0xff]  ;;  %v428_v52 = vpack.c.bf16 %v35_v48, %v34_v47  ;;  %v36_v54 = vld [vmem:[%s692_s1 + $0x60] sm:$0xff]  ;;  %v54_v56 = vld [vmem:[%s692_s1 + $0xf0] sm:$0xff] }
  0x12   :  { %423 = vmatprep.subr.bf16.mxu0 %v422_v37  ;;  %v430_v53 = vpack.c.bf16 %v53_v50, %v52_v49  ;;  %v37_v55 = vld [vmem:[%s692_s1 + $0x68] sm:$0xff]  ;;  %v55_v57 = vld [vmem:[%s692_s1 + $0xf8] sm:$0xff]  ;;  %v23_v58 = vld [vmem:[%s691_s0 + $0x10] sm:$0xff] }
  0x13   :  { %446 = vmatpush3.bf16.msra.mxu1 %v445_v42  ;;  %v432_v59 = vpack.c.bf16 %v37_v55, %v36_v54  ;;  %v434_v60 = vpack.c.bf16 %v55_v57, %v54_v56  ;;  %v38_v61 = vld [vmem:[%s692_s1 + $0x70] sm:$0xff]  ;;  %v39_v62 = vld [vmem:[%s692_s1 + $0x78] sm:$0xff]  ;;  %v21_v0 = vld [vmem:[%s691_s0] sm:$0xff] }
  0x14   :  { %447 = vmatprep.subr.bf16.mxu1 %v486_v7  ;;  %v436_v63 = vpack.c.bf16 %v39_v62, %v38_v61  ;;  %v216_v1 = vld [vmem:[%s694_s3] sm:$0xff]  ;;  %v217_v2 = vld [vmem:[%s694_s3 + $0x8] sm:$0xff]  ;;  %v218_v3 = vld [vmem:[%s694_s3 + $0x10] sm:$0xff] }
  0x15   :  { %425 = vmatpush3.bf16.msra.mxu0 %v424_v43  ;;  %v451_v4 = vpack.c.bf16 %v217_v2, %v216_v1  ;;  %v219_v5 = vld [vmem:[%s694_s3 + $0x18] sm:$0xff]  ;;  %v323_v12 = vld [vmem:[%s693_s2] ss:$0 sm:$0xff]  ;;  %s315_s2 = sshll.u32 %s491_s15, 4  ;;  %s316_s2 = int_to_ptr.vmem [resolvable:$true] %s315_s2 }
  0x16   :  { %427 = vmatprep.subr.bf16.mxu0 %v426_v46  ;;  %v454_v6 = vpack.c.bf16 %v219_v5, %v218_v3  ;;  %s462_s16 = scalar_lea.vmem %s316_s2, 128  ;;  %p467_p1 = scmp.lt.s32.totalorder %s316_s2, %s316_s2 }
  0x17   :  { %449 = vmatpush3.bf16.msra.mxu1 %v448_v51  ;;  %p463_p0 = scmp.ne.s32.totalorder %s316_s2, %s462_s16  ;;  %p468_p2 = scmp.lt.s32.totalorder %s462_s16, %s462_s16 }
  0x18   :  { %450 = vmatprep.subr.bf16.mxu1 %v486_v7 }
  0x19   :  { %429 = vmatpush3.bf16.msra.mxu0 %v428_v52  ;;  %p469_p3 = por %p468_p2, %p467_p1 }
  0x1a   :  { %431 = vmatprep.subr.bf16.mxu0 %v430_v53  ;;  %393 = vmatmul.mubr.msk.f32.vlgmr.msra.gmra.mrb[0].mxu1 %vm71_vm1, %v23_v58 }
  0x1b   :  { %403 = vmatprep.mubr.msk.f32.mxu1 %vm487_vm0, %v488_v8  ;;  %452 = vmatpush3.bf16.msra.mxu1 %v451_v4  ;;  %p470_p4 = pnand %p469_p3, %p463_p0 }
  0x1c   :  { %453 = vmatprep.subr.bf16.mxu1 %v486_v7  ;;  %v325_v7 = vld [vmem:[%s695_s4] ss:$0 sm:$0xff] }
  0x1d   :  { %433 = vmatpush3.bf16.msra.mxu0 %v432_v59 }
  0x1e   :  { %435 = vmatprep.subr.bf16.mxu0 %v434_v60 }
  0x1f   :  { %455 = vmatpush3.bf16.msra.mxu1 %v454_v6 }
  0x21   :  { %437 = vmatpush3.bf16.msra.mxu0 %v436_v63 }
  0x24   :  { %140 = vmatmul.mubr.f32.vlgmr.msra.gmra.mrb[0].mxu0 %v21_v0 }
  0xed   :  { %v211_v8 = vpop.f32.mrb[0].mxu1 }
  0xee   :  { %v394_v9 = vpop.f32.mrb[1].mxu1 }
  0xf7   :  { %v359_v10 = vpop.f32.mrb[0].mxu0 }
  0xf8   :  { %v360_v11 = vpop.f32.mrb[1].mxu0 }
  0xf9   :  { %v361_v13 = vadd.f32 %v360_v11, %v359_v10 }
  0xfb   :  { %v142_v14 = vadd.f32 %v361_v13, %v323_v12 }
  0xfd   :  { %v212_v15 = vadd.f32 %v211_v8, %v142_v14 }
  0xff   :  { %v215_v16 = vmax.f32 %v212_v15, 0.0 }
 0x101   :  { %228 = vrot.lane.b32.xlu0 %v215_v16, %s489_s12 }
 0x173   :  { %v229_v17 = vpop.permute.xlu0 %228 }
 0x174   :  { %404 = vmatmul.mubr.msk.f32.vlgmr.msra.gmra.mrb[2].mxu1 %vm230_vm2, %v229_v17 }
 0x247   :  { %v299_v18 = vpop.f32.mrb[2].mxu1 }
 0x248   :  { %v300_v19 = vadd.f32 %v325_v7, %v299_v18  ;;  %v405_v20 = vpop.f32.mrb[3].mxu1 }
 0x24a   :  { %304 = vrot.lane.b32.xlu0 %v300_v19, %s490_s14 }
 0x2bc   :  { %v305_v21 = vpop.permute.xlu0 %304 }
 0x2bd   :  { %v307_v22 = vsel %vm230_vm2, %v212_v15, %v305_v21 }
 0x2be   :  { %308 = vst [vmem:[#allocation2] sm:$0xff] %v307_v22 }
 0x2bf   :  { %473 = shalt.err (!%p470_p4)
}
 0x2c0   :  { %s474_s18 = scalar_lea.hbm %s696_s5, 128 }
 0x2c1   :  { %p475_p5 = scmp.ne.s32.totalorder %s696_s5, %s474_s18  ;;  %p478_p6 = scmp.lt.u32.totalorder %s474_s18, %s696_s5 }
 0x2c3   :  { %p480_p7 = pnand %p478_p6, %p475_p5 }
 0x2c5   :  { %483 = shalt.err (!%p480_p7)
}
 0x2c6   :  { %318 = dma.vmem_to_hbm [thread:$0]  %s316_s2, 128, %s696_s5, [#allocation3]  }
 0x2c7   :  { %484 = dma.done.wait [#allocation3], 128  }
 0x2c8   :  { %485 = vsyncadd [#allocation3], 4294967168 }
 0x2c9   :  { %322 = vsyncpa [#allocation3], 1 }

</bundles_post_ra>
